<compile_context>
chip_gen: v5e
topology: v5e:2x2
jax: 0.10.0
libtpu: 0.0.40
codegen_flags: <defaults>
</compile_context>

<pallas_src>
import numpy as np
import jax
import jax.numpy as jnp
from jax import lax
from jax.experimental import pallas as pl
from jax.experimental.pallas import tpu as pltpu


def _round_up(a: int, m: int) -> int:
    return (a + m - 1) // m * m


def _mixup_kernel(idx_ref, lam_ref, x_ref, o_ref):
    """Blend each row of a (B, tile_s, 128) VMEM slab with its permuted partner.

    idx_ref: (B,) int32 permutation in SMEM (scalar prefetch).
    lam_ref: (1,) f32 in SMEM.
    x_ref / o_ref: (B, tile_s, 128) VMEM blocks.
    """
    lam = lam_ref[0]
    batch = x_ref.shape[0]

    def body(b, carry):
        j = idx_ref[b]                                  # scalar read from SMEM
        xi = x_ref[b].astype(jnp.float32)               # (tile_s, 128)
        xj = x_ref[j].astype(jnp.float32)               # permuted partner, VMEM gather
        o_ref[b] = (lam * xi + (1.0 - lam) * xj).astype(o_ref.dtype)
        return carry

    lax.fori_loop(0, batch, body, 0, unroll=batch <= 32)


def _mixup_blend(x, index, lam_arr):
    """lam * x + (1 - lam) * x[index] for x of shape (B, ...) via Pallas."""
    B = x.shape[0]
    D = int(np.prod(x.shape[1:])) if x.ndim > 1 else 1
    itemsize = jnp.dtype(x.dtype).itemsize
    lane = 128
    sub = max(8, 32 // itemsize)        # sublanes per fully-packed tile for this dtype

    # Rows of 128 lanes needed to hold one flattened example (padded up).
    s_needed = _round_up(max(pl.cdiv(D, lane), 1), sub)

    # Pick tile_s so one (B, tile_s, 128) block carries ~2 MiB of payload.
    target_bytes = 2 << 20
    tile_s = (target_bytes // (B * lane * itemsize)) // sub * sub
    tile_s = int(max(sub, min(tile_s, s_needed)))

    s_pad = _round_up(s_needed, tile_s)
    d_pad = s_pad * lane
    num_tiles = s_pad // tile_s

    x_flat = x.reshape(B, D)
    if d_pad != D:
        x_flat = jnp.pad(x_flat, ((0, 0), (0, d_pad - D)))
    x3 = x_flat.reshape(B, s_pad, lane)

    out = pl.pallas_call(
        _mixup_kernel,
        out_shape=jax.ShapeDtypeStruct((B, s_pad, lane), x.dtype),
        grid_spec=pltpu.PrefetchScalarGridSpec(
            num_scalar_prefetch=1,                          # permutation -> SMEM
            grid=(num_tiles,),
            in_specs=[
                pl.BlockSpec(memory_space=pltpu.SMEM),      # lam scalar
                pl.BlockSpec((B, tile_s, lane), lambda d, idx: (0, d, 0)),
            ],
            out_specs=pl.BlockSpec((B, tile_s, lane), lambda d, idx: (0, d, 0)),
        ),
        compiler_params=pltpu.CompilerParams(
            dimension_semantics=("parallel",),              # v7x: split tiles over 2 TCs
            vmem_limit_bytes=32 << 20,
        ),
    )(index, lam_arr, x3)

    out = out.reshape(B, d_pad)
    if d_pad != D:
        out = out[:, :D]
    return out.reshape(x.shape)


def mixup_randomly(batch_image, batch_target, batch_group, key):
    """Forward pass of MixupRandomly.

    Randomness (lam ~ Beta(1,1), randperm) is drawn deterministically from
    `key` in plain JAX (host RNG in the original has no in-kernel equivalent);
    the image blend runs in the Pallas kernel.  The tiny (B, T) target blend
    is intentionally left to XLA (cheaper than another kernel launch).
    """
    batch_size = batch_group.shape[0]
    k_lam, k_perm = jax.random.split(key)
    lam = jax.random.beta(k_lam, 1.0, 1.0)                  # Beta(1,1) == Uniform(0,1)
    lam_arr = jnp.asarray([lam], dtype=jnp.float32)
    index = jax.random.permutation(k_perm, batch_size).astype(jnp.int32)

    inputs_mix = _mixup_blend(batch_image, index, lam_arr)
    targets_mix = lam * batch_target + (1.0 - lam) * batch_target[index]
    return inputs_mix, targets_mix, index, lam


if __name__ == "__main__":
    key = jax.random.PRNGKey(0)
    k_img, k_tgt, k_run = jax.random.split(key, 3)

    B, C, H, W = 2, 4, 16, 16
    T = 8  # number of target classes

    batch_image = jax.random.normal(k_img, (B, C, H, W), dtype=jnp.float32)
    batch_target = jax.random.uniform(k_tgt, (B, T), dtype=jnp.float32)
    batch_group = jnp.zeros((B,), dtype=jnp.int32)

    inputs_mix, targets_mix, index, lam = mixup_randomly(
        batch_image, batch_target, batch_group, k_run)
    jax.block_until_ready((inputs_mix, targets_mix))

    # Pure-JAX reference check
    ref_inputs = lam * batch_image + (1.0 - lam) * batch_image[index]
    ref_targets = lam * batch_target + (1.0 - lam) * batch_target[index]
    np.testing.assert_allclose(np.asarray(inputs_mix), np.asarray(ref_inputs),
                               rtol=1e-6, atol=1e-6)
    np.testing.assert_allclose(np.asarray(targets_mix), np.asarray(ref_targets),
                               rtol=1e-6, atol=1e-6)

    print("KERNEL_OK")
</pallas_src>

<mosaic_0001>
module attributes {stable_mosaic.version = 11 : i64} {
  func.func @_mixup_kernel(%arg0: i32, %arg1: memref<2xi32, #tpu.memory_space<smem>>, %arg2: memref<1xf32, #tpu.memory_space<smem>>, %arg3: memref<2x8x128xf32, #tpu.memory_space<vmem>>, %arg4: memref<2x8x128xf32, #tpu.memory_space<vmem>>) attributes {dimension_semantics = [#tpu.dimension_semantics<parallel>], iteration_bounds = array<i64: 1>, scalar_prefetch = 1 : i64, scratch_operands = 0 : i64, tpu.core_type = #tpu.core_type<tc>, window_params = [{transform_indices = @transform_0, window_bounds = array<i64: 1>}, {transform_indices = @transform_1, window_bounds = array<i64: 2, 8, 128>}, {transform_indices = @transform_2, window_bounds = array<i64: 2, 8, 128>}]} {
    %c0 = arith.constant 0 : index
    %0 = memref.load %arg2[%c0] : memref<1xf32, #tpu.memory_space<smem>>
    %c0_i32 = arith.constant 0 : i32
    %1 = arith.index_cast %c0_i32 : i32 to index
    %2 = memref.load %arg1[%1] : memref<2xi32, #tpu.memory_space<smem>>
    %3 = arith.index_cast %c0_i32 : i32 to index
    %c0_0 = arith.constant 0 : index
    %c0_1 = arith.constant 0 : index
    %4 = vector.load %arg3[%3, %c0_0, %c0_1] : memref<2x8x128xf32, #tpu.memory_space<vmem>>, vector<1x8x128xf32>
    %5 = vector.shape_cast %4 : vector<1x8x128xf32> to vector<8x128xf32>
    %6 = arith.index_cast %2 : i32 to index
    %c0_2 = arith.constant 0 : index
    %c0_3 = arith.constant 0 : index
    %7 = vector.load %arg3[%6, %c0_2, %c0_3] : memref<2x8x128xf32, #tpu.memory_space<vmem>>, vector<1x8x128xf32>
    %8 = vector.shape_cast %7 : vector<1x8x128xf32> to vector<8x128xf32>
    %9 = vector.broadcast %0 : f32 to vector<8x128xf32>
    %10 = arith.mulf %9, %5 : vector<8x128xf32>
    %cst = arith.constant 1.000000e+00 : f32
    %11 = arith.subf %cst, %0 : f32
    %12 = vector.broadcast %11 : f32 to vector<8x128xf32>
    %13 = arith.mulf %12, %8 : vector<8x128xf32>
    %14 = arith.addf %10, %13 : vector<8x128xf32>
    %15 = arith.index_cast %c0_i32 : i32 to index
    %c0_4 = arith.constant 0 : index
    %c0_5 = arith.constant 0 : index
    %16 = vector.load %arg4[%15, %c0_4, %c0_5] : memref<2x8x128xf32, #tpu.memory_space<vmem>>, vector<1x8x128xf32>
    %17 = vector.shape_cast %16 : vector<1x8x128xf32> to vector<8x128xf32>
    %18 = vector.shape_cast %14 : vector<8x128xf32> to vector<1x8x128xf32>
    tpu.vector_store %arg4[%15, %c0_4, %c0_5], %18 {strides = array<i32>} : memref<2x8x128xf32, #tpu.memory_space<vmem>>, vector<1x8x128xf32>,
    %c1_i32 = arith.constant 1 : i32
    %19 = arith.index_cast %c1_i32 : i32 to index
    %20 = memref.load %arg1[%19] : memref<2xi32, #tpu.memory_space<smem>>
    %21 = arith.index_cast %c1_i32 : i32 to index
    %c0_6 = arith.constant 0 : index
    %c0_7 = arith.constant 0 : index
    %22 = vector.load %arg3[%21, %c0_6, %c0_7] : memref<2x8x128xf32, #tpu.memory_space<vmem>>, vector<1x8x128xf32>
    %23 = vector.shape_cast %22 : vector<1x8x128xf32> to vector<8x128xf32>
    %24 = arith.index_cast %20 : i32 to index
    %c0_8 = arith.constant 0 : index
    %c0_9 = arith.constant 0 : index
    %25 = vector.load %arg3[%24, %c0_8, %c0_9] : memref<2x8x128xf32, #tpu.memory_space<vmem>>, vector<1x8x128xf32>
    %26 = vector.shape_cast %25 : vector<1x8x128xf32> to vector<8x128xf32>
    %27 = vector.broadcast %0 : f32 to vector<8x128xf32>
    %28 = arith.mulf %27, %23 : vector<8x128xf32>
    %cst_10 = arith.constant 1.000000e+00 : f32
    %29 = arith.subf %cst_10, %0 : f32
    %30 = vector.broadcast %29 : f32 to vector<8x128xf32>
    %31 = arith.mulf %30, %26 : vector<8x128xf32>
    %32 = arith.addf %28, %31 : vector<8x128xf32>
    %33 = arith.index_cast %c1_i32 : i32 to index
    %c0_11 = arith.constant 0 : index
    %c0_12 = arith.constant 0 : index
    %34 = vector.load %arg4[%33, %c0_11, %c0_12] : memref<2x8x128xf32, #tpu.memory_space<vmem>>, vector<1x8x128xf32>
    %35 = vector.shape_cast %34 : vector<1x8x128xf32> to vector<8x128xf32>
    %36 = vector.shape_cast %32 : vector<8x128xf32> to vector<1x8x128xf32>
    tpu.vector_store %arg4[%33, %c0_11, %c0_12], %36 {strides = array<i32>} : memref<2x8x128xf32, #tpu.memory_space<vmem>>, vector<1x8x128xf32>,
    %c2_i32 = arith.constant 2 : i32
    return
  }
  func.func @transform_0(%arg0: i32, %arg1: memref<2xi32, #tpu.memory_space<smem>>) -> i32 {
    %c0_i32 = arith.constant 0 : i32
    %c0_i32_0 = arith.constant 0 : i32
    return %c0_i32 : i32
  }
  func.func @transform_1(%arg0: i32, %arg1: memref<2xi32, #tpu.memory_space<smem>>) -> (i32, i32, i32) {
    %c0_i32 = arith.constant 0 : i32
    %c0_i32_0 = arith.constant 0 : i32
    %c0_i32_1 = arith.constant 0 : i32
    return %c0_i32, %arg0, %c0_i32_0 : i32, i32, i32
  }
  func.func @transform_2(%arg0: i32, %arg1: memref<2xi32, #tpu.memory_space<smem>>) -> (i32, i32, i32) {
    %c0_i32 = arith.constant 0 : i32
    %c0_i32_0 = arith.constant 0 : i32
    %c0_i32_1 = arith.constant 0 : i32
    return %c0_i32, %arg0, %c0_i32_0 : i32, i32, i32
  }
}

</mosaic_0001>

<bundles_post_ra>
// kernel: tpu_custom_call.1
= control target key start
LH: loop header
LB: loop body
LE: loop exit
PB: predicated region body
PF: predicated region fallthrough
CT: control target
= control target key end

     0   :  { %s159_s15 = smov [#allocation3]   ;;  %s205_s0 = inlined_call_operand.vmem [shape: s32[2], index: 0, kind: input, shape index: {}]   ;;  %s206_s1 = inlined_call_operand.<no memory space> [shape: f32[1], index: 1, kind: input, shape index: {}]   ;;  %s207_s2 = inlined_call_operand.hbm [shape: f32[2,8,128], index: 2, kind: input, shape index: {}]   ;;  %s208_s3 = inlined_call_operand.hbm [shape: f32[2,8,128], index: 3, kind: output, shape index: {}]  }
   0x1   :  { %s9_s14 = sshll.u32 %s205_s0, 4  ;;  %s10_s14 = int_to_ptr.vmem [resolvable:$true] %s9_s14 }
   0x2   :  { %12 = dma.vmem_to_smem %s10_s14, 16, %s159_s15, [#allocation2] }
   0x3   :  { %153 = dma.done.wait [#allocation2], 16 }
   0x4   :  { %154 = vsyncadd [#allocation2], 4294967280 }
   0x5   :  { %16 = sfence }
   0x6   :  { %17 = vsyncpa [#allocation6], 0 }
   0x7   :  { %18 = vsyncpa [#allocation7], 0  ;;  %s25_s18 = sshll.u32 %s207_s2, 4  ;;  %s160_s19 = smov [#allocation5]   ;;  %s26_s18 = int_to_ptr.hbm [resolvable:$true] %s25_s18 }
   0x8   :  { %s27_s20 = sshll.u32 %s160_s19, 4  ;;  %s161_s21 = smov 128   ;;  %s28_s20 = int_to_ptr.vmem [resolvable:$true] %s27_s20 }
   0x9   :  { %s162_s22 = smov 8  }
   0xa   :  { %33 = dma.hbm_to_vmem [thread:$0]  %s26_s18, 256, %s28_s20, [#allocation6], %s161_s21, %s161_s21, %s162_s22  }
   0xb   :  { %155 = dma.done.wait [#allocation6], 256  }
   0xc   :  { %156 = vsyncadd [#allocation6], 4294967040  ;;  %s39_s0 = sld [smem:[#allocation3]]  ;;  %v44_v0 = vstv %s206_s1  ;;  %v40_v1 = vld [vmem:[#allocation5] sm:$0xff]  ;;  %v53_v3 = vld [vmem:[#allocation5 + $0x8] sm:$0xff]  ;;  %s163_s5 = smov [#allocation8]  }
   0xd   :  { %s86_s23 = sld [smem:[#allocation3 + $0x1]]  ;;  %v45_v4 = vmul.f32 %v44_v0, %v40_v1  ;;  %v57_v6 = vmul.f32 %v53_v3, %v44_v0  ;;  %s66_s6 = sshll.u32 %s163_s5, 4  ;;  %s67_s6 = int_to_ptr.vmem [resolvable:$true] %s66_s6 }
   0xe   :  { %s46_s26 = ssub.f32 1.0, %s206_s1  ;;  %s68_s9 = sshll.u32 %s208_s3, 4  ;;  %s69_s9 = int_to_ptr.hbm [resolvable:$true] %s68_s9 }
  0x10   :  { %v47_v2 = vstv %s46_s26 }
  0x12   :  { %s85_s28 = sshll.u32 %s39_s0, 3 }
  0x13   :  { %s87_s29 = sshll.u32 %s86_s23, 3  ;;  %s42_s30 = scalar_lea.vmem [#allocation5], %s85_s28 }
  0x14   :  { %v43_v5 = vld [vmem:[%s42_s30] sm:$0xff]  ;;  %s55_s4 = scalar_lea.vmem [#allocation5], %s87_s29 }
  0x15   :  { %v48_v7 = vmul.f32 %v47_v2, %v43_v5  ;;  %v56_v8 = vld [vmem:[%s55_s4] sm:$0xff] }
  0x16   :  { %v58_v9 = vmul.f32 %v56_v8, %v47_v2 }
  0x17   :  { %v49_v10 = vadd.f32 %v48_v7, %v45_v4 }
  0x18   :  { %v59_v11 = vadd.f32 %v58_v9, %v57_v6 }
  0x19   :  { %50 = vst [vmem:[#allocation8] sm:$0xff] %v49_v10 }
  0x1a   :  { %61 = vst [vmem:[#allocation8 + $0x8] sm:$0xff] %v59_v11 }
  0x1b   :  { %74 = dma.vmem_to_hbm [thread:$0]  %s67_s6, 256, %s69_s9, [#allocation7], %s161_s21, %s161_s21, %s162_s22  }
  0x1c   :  { %157 = dma.done.wait [#allocation7], 256  }
  0x1d   :  { %158 = vsyncadd [#allocation7], 4294967040 }
  0x1e   :  { %79 = vsyncpa [#allocation6], 1 }
  0x1f   :  { %80 = vsyncpa [#allocation7], 1 }

</bundles_post_ra>
